<compile_context>
chip_gen: v5e
topology: v5e:2x2
jax: 0.10.0
libtpu: 0.0.40
codegen_flags: <defaults>
</compile_context>

<pallas_src>
import jax
import jax.numpy as jnp
from jax.experimental import pallas as pl
from jax.experimental.pallas import tpu as pltpu


def _fused_kernel(xs_ref, w1_ref, b1_ref, w2_ref, b2_ref, o_ref):
    # conv1 (1x1; padding + ky-shifts folded into xs) as one matmul.
    # b1_ref already contains b1 + 3, so clip(...) == 6 * hardsigmoid(t1).
    y = jnp.dot(w1_ref[...], xs_ref[0], preferred_element_type=jnp.float32)
    a = jnp.clip(y + b1_ref[...], 0.0, 6.0)
    # conv2 as a banded matmul; the /6 of t4 and the final min/6 /6 scaling are
    # pre-folded into w2_ref / b2_ref, so min(z, 1/6) == min(min(t6,6)/6,6)/6.
    z = jnp.dot(w2_ref[...], a, preferred_element_type=jnp.float32) + b2_ref[...]
    o_ref[0] = jnp.minimum(z, 1.0 / 6.0)


def model_forward(x, w1, b1, w2, b2):
    """x: (N, 3, H, W) float32 NCHW (same layout as PyTorch)."""
    N, Cin, H, W = x.shape
    Cout1 = w1.shape[0]
    Cout2, C2in, K, _ = w2.shape
    Hp, Wp = H + 2, W + 2
    assert C2in == Hp, "other_conv in_channels must equal H+2 (permuted layout)"
    Ho = Wp - K + 1          # conv2 output "height"  (= W for K=3)
    Wo = Cout1 - K + 1       # conv2 output "width"
    assert Ho >= 1 and Wo >= 1

    f32 = jnp.float32
    CHp = Cin * Hp            # conv1 contraction rows per ky copy
    OHp = Cout1 * Hp          # conv1 output rows per ky copy

    # ---------------- weight restructuring (tiny, XLA-side) -------------------
    # conv1 as a block matmul, replicated K times (one copy per ky lane-shift).
    w1k = jnp.kron(w1.reshape(Cout1, Cin).astype(f32), jnp.eye(Hp, dtype=f32))
    w1big = jnp.kron(jnp.eye(K, dtype=f32), w1k)                      # (K*OHp, K*CHp)
    b1big = jnp.tile(jnp.repeat(b1.astype(f32), Hp), K)[:, None] + 3.0  # (K*OHp, 1)

    # conv2: rows (j, o), cols (ky, c1, h); kx = c1 - j is the band.
    c1_idx = jnp.arange(Cout1)
    j_idx = jnp.arange(Wo)
    kx = c1_idx[None, :] - j_idx[:, None]                             # (Wo, Cout1)
    valid = (kx >= 0) & (kx < K)
    w2g = w2.astype(f32)[:, :, :, jnp.clip(kx, 0, K - 1)]             # (o, h, ky, j, c1)
    w2g = jnp.where(valid[None, None, None], w2g, 0.0)
    w2big = w2g.transpose(3, 0, 2, 4, 1).reshape(Wo * Cout2, K * OHp)
    # fold t4's /6 and the double clamp-max(.,6)/6 /6 into the weights/bias:
    w2big = w2big * (1.0 / (6.0 * 36.0))
    b2big = (jnp.tile(b2.astype(f32), Wo) * (1.0 / 36.0))[:, None]    # (Wo*Cout2, 1)

    # --------------- input restructuring (pad + ky-rolls + lane packing) ------
    # conv1 is pointwise, so the ky lane-shifts conv2 needs commute with it:
    # stack rolled *inputs* here instead of rolling/concatenating in the kernel.
    xp = jnp.pad(x.astype(f32), ((0, 0), (0, 0), (1, 1), (1, 1)))     # zero border
    xpf = xp.reshape(N, CHp, Wp)
    xs = jnp.concatenate([jnp.roll(xpf, -ky, axis=-1) for ky in range(K)], axis=1)

    # pack NB images along the lane axis per grid step: fewer, wider steps
    # (overhead amortization on v5e/v6e) with an even 2-way split for v7x.
    NB = max(1, min((N + 1) // 2, 8))
    G = (N + NB - 1) // NB
    Npad = G * NB
    xs = jnp.pad(xs, ((0, Npad - N), (0, 0), (0, 0)))
    xs = xs.reshape(G, NB, K * CHp, Wp).transpose(0, 2, 1, 3).reshape(G, K * CHp, NB * Wp)

    out_slab = pl.pallas_call(
        _fused_kernel,
        out_shape=jax.ShapeDtypeStruct((G, Wo * Cout2, NB * Wp), f32),
        grid=(G,),
        in_specs=[
            pl.BlockSpec((1, K * CHp, NB * Wp), lambda g: (g, 0, 0)),
            pl.BlockSpec((K * OHp, K * CHp), lambda g: (0, 0)),
            pl.BlockSpec((K * OHp, 1), lambda g: (0, 0)),
            pl.BlockSpec((Wo * Cout2, K * OHp), lambda g: (0, 0)),
            pl.BlockSpec((Wo * Cout2, 1), lambda g: (0, 0)),
        ],
        out_specs=pl.BlockSpec((1, Wo * Cout2, NB * Wp), lambda g: (g, 0, 0)),
        compiler_params=pltpu.CompilerParams(
            dimension_semantics=("parallel",),
        ),
    )(xs, w1big, b1big, w2big, b2big)

    # undo lane packing, apply the final permute(0,3,1,2) layout, crop the
    # roll-wrapped columns (>= Ho) and the batch padding.
    out = out_slab.reshape(G, Wo, Cout2, NB, Wp).transpose(0, 3, 1, 2, 4)
    out = out.reshape(Npad, Wo, Cout2, Wp)[:N, :, :, :Ho]
    return out


def reference_forward(x, w1, b1, w2, b2):
    """Plain-JAX reference mirroring the PyTorch forward exactly."""
    dn = ("NCHW", "OIHW", "NCHW")
    t1 = jax.lax.conv_general_dilated(
        x, w1, (1, 1), ((1, 1), (1, 1)), dimension_numbers=dn
    ) + b1[None, :, None, None]
    t4 = jnp.clip(t1 + 3.0, 0.0, 6.0) / 6.0
    t5 = t4.transpose(0, 2, 3, 1)
    t6 = jax.lax.conv_general_dilated(
        t5, w2, (1, 1), "VALID", dimension_numbers=dn
    ) + b2[None, :, None, None]
    t8 = jnp.minimum(t6, 6.0) / 6.0
    t9 = t8.transpose(0, 3, 1, 2)
    return jnp.minimum(t9, 6.0) / 6.0


if __name__ == "__main__":
    key = jax.random.PRNGKey(0)
    k1, k2, k3, k4, kx = jax.random.split(key, 5)

    Cin, Cmid, K2 = 3, 8, 3
    # deterministic synthetic parameters (module shapes; see TODO about K2)
    w1 = jax.random.normal(k1, (Cmid, Cin, 1, 1), jnp.float32) * 0.5
    b1 = jax.random.normal(k2, (Cmid,), jnp.float32) * 0.1
    w2 = jax.random.normal(k3, (Cmid, Cmid, K2, K2), jnp.float32) * 0.1
    b2 = jax.random.normal(k4, (Cmid,), jnp.float32) * 0.1

    # H must be 6 so the permuted tensor's "channel" axis (H+2) == 8, matching
    # other_conv's in_channels.  W=126 makes the padded width exactly 128 lanes.
    x = jax.random.normal(kx, (3, 3, 6, 126), jnp.float32)

    fwd = jax.jit(model_forward)
    out = jax.block_until_ready(fwd(x, w1, b1, w2, b2))
    ref = jax.block_until_ready(reference_forward(x, w1, b1, w2, b2))

    assert out.shape == ref.shape, (out.shape, ref.shape)
    err = float(jnp.max(jnp.abs(out - ref)))
    assert err < 1e-4, err
    print("KERNEL_OK")
</pallas_src>

<mosaic_0001>
module attributes {stable_mosaic.version = 11 : i64} {
  func.func @_fused_kernel(%arg0: i32, %arg1: memref<1x72x256xf32, #tpu.memory_space<vmem>>, %arg2: memref<192x72xf32, #tpu.memory_space<vmem>>, %arg3: memref<192x1xf32, #tpu.memory_space<vmem>>, %arg4: memref<48x192xf32, #tpu.memory_space<vmem>>, %arg5: memref<48x1xf32, #tpu.memory_space<vmem>>, %arg6: memref<1x48x256xf32, #tpu.memory_space<vmem>>) attributes {dimension_semantics = [#tpu.dimension_semantics<parallel>], iteration_bounds = array<i64: 2>, scalar_prefetch = 0 : i64, scratch_operands = 0 : i64, tpu.core_type = #tpu.core_type<tc>, window_params = [{transform_indices = @transform_0, window_bounds = array<i64: 1, 72, 256>}, {pipeline_mode = #tpu.pipeline_mode<synchronous>, transform_indices = @transform_1, window_bounds = array<i64: 192, 72>}, {pipeline_mode = #tpu.pipeline_mode<synchronous>, transform_indices = @transform_2, window_bounds = array<i64: 192, 1>}, {pipeline_mode = #tpu.pipeline_mode<synchronous>, transform_indices = @transform_3, window_bounds = array<i64: 48, 192>}, {pipeline_mode = #tpu.pipeline_mode<synchronous>, transform_indices = @transform_4, window_bounds = array<i64: 48, 1>}, {transform_indices = @transform_5, window_bounds = array<i64: 1, 48, 256>}]} {
    %c0 = arith.constant 0 : index
    %c0_0 = arith.constant 0 : index
    %0 = vector.load %arg2[%c0, %c0_0] : memref<192x72xf32, #tpu.memory_space<vmem>>, vector<192x72xf32>
    %c0_1 = arith.constant 0 : index
    %c0_2 = arith.constant 0 : index
    %c0_3 = arith.constant 0 : index
    %1 = vector.load %arg1[%c0_1, %c0_2, %c0_3] : memref<1x72x256xf32, #tpu.memory_space<vmem>>, vector<1x72x256xf32>
    %2 = vector.shape_cast %1 : vector<1x72x256xf32> to vector<72x256xf32>
    %cst = arith.constant dense<0.000000e+00> : vector<192x256xf32>
    %3 = tpu.matmul %0, %2, %cst {dimension_numbers = #tpu.dot_dimension_numbers<[1], [0], [0], [1], [0, 0, 1, 1], [], []>} : vector<192x72xf32>, vector<72x256xf32>, vector<192x256xf32> -> vector<192x256xf32>
    %c0_4 = arith.constant 0 : index
    %c0_5 = arith.constant 0 : index
    %4 = vector.load %arg3[%c0_4, %c0_5] : memref<192x1xf32, #tpu.memory_space<vmem>>, vector<192x1xf32>
    %5 = vector.broadcast %4 : vector<192x1xf32> to vector<192x256xf32>
    %6 = arith.addf %3, %5 : vector<192x256xf32>
    %cst_6 = arith.constant 0.000000e+00 : f32
    %cst_7 = arith.constant 6.000000e+00 : f32
    %7 = vector.broadcast %cst_6 : f32 to vector<192x256xf32>
    %8 = arith.maximumf %7, %6 : vector<192x256xf32>
    %9 = vector.broadcast %cst_7 : f32 to vector<192x256xf32>
    %10 = arith.minimumf %9, %8 : vector<192x256xf32>
    %c0_8 = arith.constant 0 : index
    %c0_9 = arith.constant 0 : index
    %11 = vector.load %arg4[%c0_8, %c0_9] : memref<48x192xf32, #tpu.memory_space<vmem>>, vector<48x192xf32>
    %cst_10 = arith.constant dense<0.000000e+00> : vector<48x256xf32>
    %12 = tpu.matmul %11, %10, %cst_10 {dimension_numbers = #tpu.dot_dimension_numbers<[1], [0], [0], [1], [0, 0, 1, 1], [], []>} : vector<48x192xf32>, vector<192x256xf32>, vector<48x256xf32> -> vector<48x256xf32>
    %c0_11 = arith.constant 0 : index
    %c0_12 = arith.constant 0 : index
    %13 = vector.load %arg5[%c0_11, %c0_12] : memref<48x1xf32, #tpu.memory_space<vmem>>, vector<48x1xf32>
    %14 = vector.broadcast %13 : vector<48x1xf32> to vector<48x256xf32>
    %15 = arith.addf %12, %14 : vector<48x256xf32>
    %cst_13 = arith.constant 0.166666672 : f32
    %16 = vector.broadcast %cst_13 : f32 to vector<48x256xf32>
    %17 = arith.minimumf %15, %16 : vector<48x256xf32>
    %c0_14 = arith.constant 0 : index
    %c0_15 = arith.constant 0 : index
    %c0_16 = arith.constant 0 : index
    %18 = vector.load %arg6[%c0_14, %c0_15, %c0_16] : memref<1x48x256xf32, #tpu.memory_space<vmem>>, vector<1x48x256xf32>
    %19 = vector.shape_cast %18 : vector<1x48x256xf32> to vector<48x256xf32>
    %20 = vector.shape_cast %17 : vector<48x256xf32> to vector<1x48x256xf32>
    tpu.vector_store %arg6[%c0_14, %c0_15, %c0_16], %20 {strides = array<i32>} : memref<1x48x256xf32, #tpu.memory_space<vmem>>, vector<1x48x256xf32>,
    return
  }
  func.func @transform_0(%arg0: i32) -> (i32, i32, i32) {
    %c0_i32 = arith.constant 0 : i32
    %c0_i32_0 = arith.constant 0 : i32
    %c0_i32_1 = arith.constant 0 : i32
    return %arg0, %c0_i32, %c0_i32_0 : i32, i32, i32
  }
  func.func @transform_1(%arg0: i32) -> (i32, i32) {
    %c0_i32 = arith.constant 0 : i32
    %c0_i32_0 = arith.constant 0 : i32
    %c0_i32_1 = arith.constant 0 : i32
    return %c0_i32, %c0_i32_0 : i32, i32
  }
  func.func @transform_2(%arg0: i32) -> (i32, i32) {
    %c0_i32 = arith.constant 0 : i32
    %c0_i32_0 = arith.constant 0 : i32
    %c0_i32_1 = arith.constant 0 : i32
    return %c0_i32, %c0_i32_0 : i32, i32
  }
  func.func @transform_3(%arg0: i32) -> (i32, i32) {
    %c0_i32 = arith.constant 0 : i32
    %c0_i32_0 = arith.constant 0 : i32
    %c0_i32_1 = arith.constant 0 : i32
    return %c0_i32, %c0_i32_0 : i32, i32
  }
  func.func @transform_4(%arg0: i32) -> (i32, i32) {
    %c0_i32 = arith.constant 0 : i32
    %c0_i32_0 = arith.constant 0 : i32
    %c0_i32_1 = arith.constant 0 : i32
    return %c0_i32, %c0_i32_0 : i32, i32
  }
  func.func @transform_5(%arg0: i32) -> (i32, i32, i32) {
    %c0_i32 = arith.constant 0 : i32
    %c0_i32_0 = arith.constant 0 : i32
    %c0_i32_1 = arith.constant 0 : i32
    return %arg0, %c0_i32, %c0_i32_0 : i32, i32, i32
  }
}

</mosaic_0001>

<bundles_post_ra>
// kernel: model_forward.1
= control target key start
LH: loop header
LB: loop body
LE: loop exit
PB: predicated region body
PF: predicated region fallthrough
CT: control target
= control target key end

     0   :  { %s1184_s18 = smov 0   ;;  %s1686_s0 = inlined_call_operand.vmem [shape: f32[2,72,256], index: 0, kind: input, shape index: {}]   ;;  %s1687_s1 = inlined_call_operand.vmem [shape: f32[192,72], index: 1, kind: input, shape index: {}]   ;;  %s1688_s2 = inlined_call_operand.vmem [shape: f32[192,1], index: 2, kind: input, shape index: {}]   ;;  %s1689_s3 = inlined_call_operand.vmem [shape: f32[48,192], index: 3, kind: input, shape index: {}]   ;;  %s1690_s4 = inlined_call_operand.vmem [shape: f32[48,1], index: 4, kind: input, shape index: {}]   ;;  %s1691_s5 = inlined_call_operand.vmem [shape: f32[2,48,256], index: 5, kind: output, shape index: {}]  }
   0x1 LB: > { %s1044_s19 = sadd.s32 4294967295, %s1151_s18   ;;  %p1048_p0 = scmp.ge.s32.totalorder %s1151_s18, 1  ;;  %s1151_s18 = sphi %s1184_s18, %s15_s18  }
   0x2   : > { %p187_p1 = scmp.lt.s32.totalorder %s1151_s18, 3 }
   0x4   : > { %p188_p2 = pnand %p1048_p0, %p187_p1 }
   0x6   : > { %191 = sbr.rel (%p188_p2) target bundleno = 544 (0x220), region = 40 }
   0xb   : > { %v282_v0 = vld [vmem:[%s1688_s2 + $0x78] sm:$0xff]  ;;  %v280_v1 = vld [vmem:[%s1688_s2 + $0x68] sm:$0xff]  ;;  %p215_p3 = scmp.lt.s32.totalorder %s1044_s19, 1  ;;  %v1153_v3 = vmov 0   ;;  %v281_v4 = vld [vmem:[%s1688_s2 + $0x70] sm:$0xff]  ;;  %vm411_vm0 = vcmask 588800  }
   0xc   : > { %v278_v2 = vld [vmem:[%s1688_s2 + $0x58] sm:$0xff]  ;;  %1142 = vset.pattern.permute.xlu0 %v1153_v3  ;;  %1144 = vset.pattern.permute.xlu2 %v1153_v3  ;;  %v279_v9 = vld [vmem:[%s1688_s2 + $0x60] sm:$0xff]  ;;  %v277_v10 = vld [vmem:[%s1688_s2 + $0x50] sm:$0xff]  ;;  %vm806_vm1 = vcmask 523264  }
   0xd   : > { %368 = vperm.xlu0 %1142, %v282_v0   ;;  %1143 = vset.pattern.permute.xlu1 %v1153_v3  ;;  %s1700_s19 = smov (!%p215_p3, %s1044_s19), 1  ;;  %v276_v17 = vld [vmem:[%s1688_s2 + $0x48] sm:$0xff]  ;;  %v275_v20 = vld [vmem:[%s1688_s2 + $0x40] sm:$0xff]  ;;  %v290_v21 = vld [vmem:[%s1688_s2 + $0xb8] sm:$0xff] }
   0xe   : > { %358 = vperm.xlu1 %1143, %v280_v1   ;;  %348 = vperm.xlu2 %1144, %v278_v2   ;;  %s1131_s26 = smul.u32 144, %s1700_s19  ;;  %v225_v28 = vld [vmem:[%s1687_s1] sm:$0xff]  ;;  %v274_v29 = vld [vmem:[%s1688_s2 + $0x38] sm:$0xff]  ;;  %v289_v30 = vld [vmem:[%s1688_s2 + $0xb0] sm:$0xff] }
   0xf   : > { %v273_v31 = vld [vmem:[%s1688_s2 + $0x30] sm:$0xff]  ;;  %v226_v32 = vld [vmem:[%s1687_s1 + $0x8] sm:$0xff]  ;;  %v287_v35 = vld [vmem:[%s1688_s2 + $0xa0] sm:$0xff]  ;;  %s1132_s16 = smul.u32 96, %s1700_s19 }
  0x10   : > { %s1207_s29 = scalar_lea.vmem %s1686_s0, %s1131_s26  ;;  %v288_v33 = vld [vmem:[%s1688_s2 + $0xa8] sm:$0xff]  ;;  %v227_v36 = vld [vmem:[%s1687_s1 + $0x10] sm:$0xff]  ;;  %v271_v37 = vld [vmem:[%s1688_s2 + $0x20] sm:$0xff] }
  0x11   : > { %v265_v5 = vld [vmem:[%s1207_s29 + $0x80] sm:$0xff]  ;;  %v266_v6 = vld [vmem:[%s1207_s29 + $0x88] sm:$0xff]  ;;  %v263_v7 = vld [vmem:[%s1207_s29 + $0x70] sm:$0xff]  ;;  %s1669_s21 = scalar_lea.vmem %s1691_s5, %s1132_s16 }
  0x12   : > { %491 = vmatpush.msra.mxu0 %v265_v5  ;;  %580 = vmatpush.msra.mxu1 %v266_v6  ;;  %v264_v8 = vld [vmem:[%s1207_s29 + $0x78] sm:$0xff]  ;;  %v261_v11 = vld [vmem:[%s1207_s29 + $0x60] sm:$0xff]  ;;  %v262_v12 = vld [vmem:[%s1207_s29 + $0x68] sm:$0xff] }
  0x13   : > { %1113 = vmatpush.msra.mxu3 %v265_v5  ;;  %1122 = vmatpush.msra.mxu2 %v266_v6  ;;  %v259_v13 = vld [vmem:[%s1207_s29 + $0x50] sm:$0xff]  ;;  %v260_v14 = vld [vmem:[%s1207_s29 + $0x58] sm:$0xff]  ;;  %v257_v15 = vld [vmem:[%s1207_s29 + $0x40] sm:$0xff] }
  0x14   : > { %492 = vmatpush.msra.mxu0 %v263_v7  ;;  %581 = vmatpush.msra.mxu1 %v264_v8  ;;  %v258_v16 = vld [vmem:[%s1207_s29 + $0x48] sm:$0xff]  ;;  %v255_v18 = vld [vmem:[%s1207_s29 + $0x30] sm:$0xff]  ;;  %v256_v19 = vld [vmem:[%s1207_s29 + $0x38] sm:$0xff] }
  0x15   : > { %363 = vperm.xlu0 %1142, %v281_v4   ;;  %1114 = vmatpush.msra.mxu3 %v263_v7  ;;  %v253_v22 = vld [vmem:[%s1207_s29 + $0x20] sm:$0xff]  ;;  %v254_v23 = vld [vmem:[%s1207_s29 + $0x28] sm:$0xff]  ;;  %v251_v24 = vld [vmem:[%s1207_s29 + $0x10] sm:$0xff] }
  0x16   : > { %353 = vperm.xlu1 %1143, %v279_v9   ;;  %343 = vperm.xlu2 %1144, %v277_v10   ;;  %v252_v25 = vld [vmem:[%s1207_s29 + $0x18] sm:$0xff]  ;;  %v249_v26 = vld [vmem:[%s1207_s29] sm:$0xff]  ;;  %v250_v27 = vld [vmem:[%s1207_s29 + $0x8] sm:$0xff] }
  0x17   : > { %493 = vmatpush.msra.mxu0 %v261_v11  ;;  %582 = vmatpush.msra.mxu1 %v262_v12  ;;  %v272_v34 = vld [vmem:[%s1688_s2 + $0x28] sm:$0xff]  ;;  %v244_v38 = vld [vmem:[%s1687_s1 + $0x98] sm:$0xff]  ;;  %v1293_v41 = vld [vmem:[%s1687_s1 + $0x90] sm:$0xff] }
  0x18   : > { %1123 = vmatpush.msra.mxu2 %v264_v8  ;;  %1115 = vmatpush.msra.mxu3 %v261_v11  ;;  %v286_v39 = vld [vmem:[%s1688_s2 + $0x98] sm:$0xff]  ;;  %v285_v43 = vld [vmem:[%s1688_s2 + $0x90] sm:$0xff]  ;;  %v245_v44 = vld [vmem:[%s1687_s1 + $0xa0] sm:$0xff] }
  0x19   : > { %494 = vmatpush.msra.mxu0 %v259_v13  ;;  %583 = vmatpush.msra.mxu1 %v260_v14  ;;  %v270_v40 = vld [vmem:[%s1688_s2 + $0x18] sm:$0xff]  ;;  %v269_v45 = vld [vmem:[%s1688_s2 + $0x10] sm:$0xff]  ;;  %v284_v46 = vld [vmem:[%s1688_s2 + $0x88] sm:$0xff] }
  0x1a   : > { %1124 = vmatpush.msra.mxu2 %v262_v12  ;;  %1116 = vmatpush.msra.mxu3 %v259_v13  ;;  %v228_v42 = vld [vmem:[%s1687_s1 + $0x18] sm:$0xff]  ;;  %v229_v47 = vld [vmem:[%s1687_s1 + $0x20] sm:$0xff]  ;;  %v268_v48 = vld [vmem:[%s1688_s2 + $0x8] sm:$0xff] }
  0x1b   : > { %495 = vmatpush.msra.mxu0 %v257_v15  ;;  %584 = vmatpush.msra.mxu1 %v258_v16  ;;  %v246_v49 = vld [vmem:[%s1687_s1 + $0xa8] sm:$0xff]  ;;  %v267_v50 = vld [vmem:[%s1688_s2] sm:$0xff]  ;;  %v247_v52 = vld [vmem:[%s1687_s1 + $0xb0] sm:$0xff] }
  0x1c   : > { %1117 = vmatpush.msra.mxu3 %v257_v15  ;;  %1125 = vmatpush.msra.mxu2 %v260_v14  ;;  %v230_v51 = vld [vmem:[%s1687_s1 + $0x28] sm:$0xff]  ;;  %v231_v53 = vld [vmem:[%s1687_s1 + $0x30] sm:$0xff]  ;;  %v248_v54 = vld [vmem:[%s1687_s1 + $0xb8] sm:$0xff] }
  0x1d   : > { %338 = vperm.xlu0 %1142, %v276_v17   ;;  %496 = vmatpush.msra.mxu0 %v255_v18  ;;  %v232_v55 = vld [vmem:[%s1687_s1 + $0x38] sm:$0xff]  ;;  %v283_v56 = vld [vmem:[%s1688_s2 + $0x80] sm:$0xff]  ;;  %v771_v59 = vld [vmem:[%s1690_s4 + $0x8] sm:$0xff] }
  0x1e   : > { %585 = vmatpush.msra.mxu1 %v256_v19  ;;  %333 = vperm.xlu1 %1143, %v275_v20   ;;  %v233_v57 = vld [vmem:[%s1687_s1 + $0x40] sm:$0xff]  ;;  %v234_v60 = vld [vmem:[%s1687_s1 + $0x48] sm:$0xff]  ;;  %v773_v61 = vld [vmem:[%s1690_s4 + $0x18] sm:$0xff] }
  0x1f   : > { %408 = vperm.xlu2 %1144, %v290_v21   ;;  %497 = vmatpush.msra.mxu0 %v253_v22  ;;  %v770_v58 = vld [vmem:[%s1690_s4] sm:$0xff]  ;;  %v235_v63 = vld [vmem:[%s1687_s1 + $0x50] sm:$0xff]  ;;  %v236_v0 = vld [vmem:[%s1687_s1 + $0x58] sm:$0xff] }
  0x20   : > { %586 = vmatpush.msra.mxu1 %v254_v23  ;;  %1118 = vmatpush.msra.mxu3 %v255_v18  ;;  %v774_v62 = vld [vmem:[%s1690_s4 + $0x20] sm:$0xff]  ;;  %v772_v1 = vld [vmem:[%s1690_s4 + $0x10] sm:$0xff]  ;;  %v775_v3 = vld [vmem:[%s1690_s4 + $0x28] sm:$0xff] }
  0x21   : > { %498 = vmatpush.msra.mxu0 %v251_v24  ;;  %1126 = vmatpush.msra.mxu2 %v258_v16  ;;  %v237_v2 = vld [vmem:[%s1687_s1 + $0x60] sm:$0xff]  ;;  %v238_v4 = vld [vmem:[%s1687_s1 + $0x68] sm:$0xff]  ;;  %v239_v5 = vld [vmem:[%s1687_s1 + $0x70] sm:$0xff] }
  0x22   : > { %587 = vmatpush.msra.mxu1 %v252_v25  ;;  %1119 = vmatpush.msra.mxu3 %v253_v22  ;;  %v240_v6 = vld [vmem:[%s1687_s1 + $0x78] sm:$0xff]  ;;  %v241_v9 = vld [vmem:[%s1687_s1 + $0x80] sm:$0xff]  ;;  %v242_v12 = vld [vmem:[%s1687_s1 + $0x88] sm:$0xff] }
  0x23   : > { %499 = vmatpush.msra.mxu0 %v249_v26  ;;  %1127 = vmatpush.msra.mxu2 %v256_v19 }
  0x24   : > { %588 = vmatpush.msra.mxu1 %v250_v27  ;;  %1051 = vmatmul.msk.f32.vlgmr.msra.gmra.mxu0 %vm411_vm0, %v225_v28 }
  0x25   : > { %1075 = vmatmul.msk.f32.vlgmr.msra.gmra.mxu1 %vm411_vm0, %v225_v28  ;;  %328 = vperm.xlu0 %1142, %v274_v29  }
  0x26   : > { %403 = vperm.xlu1 %1143, %v289_v30   ;;  %1120 = vmatpush.msra.mxu3 %v251_v24 }
  0x27   : > { %323 = vperm.xlu2 %1144, %v273_v31   ;;  %1128 = vmatpush.msra.mxu2 %v254_v23 }
  0x28   : > { %1121 = vmatpush.msra.mxu3 %v249_v26 }
  0x29   : > { %1129 = vmatpush.msra.mxu2 %v252_v25  ;;  %1070 = vmatmul.msk.f32.vlgmr.msra.gmra.mxu3 %vm411_vm0, %v244_v38 }
  0x2b   : > { %1130 = vmatpush.msra.mxu2 %v250_v27 }
  0x2c   : > { %1052 = vmatmul.msk.f32.gmra.mxu0 %vm411_vm0, %v226_v32  ;;  %1093 = vmatmul.msk.f32.vlgmr.msra.gmra.mxu2 %vm411_vm0, %v1293_v41 }
  0x2d   : > { %1076 = vmatmul.msk.f32.gmra.mxu1 %vm411_vm0, %v226_v32  ;;  %398 = vperm.xlu0 %1142, %v288_v33  }
  0x2e   : > { %318 = vperm.xlu1 %1143, %v272_v34  }
  0x2f   : > { %393 = vperm.xlu2 %1144, %v287_v35  }
  0x31   : > { %1071 = vmatmul.msk.f32.gmra.mxu3 %vm411_vm0, %v245_v44 }
  0x34   : > { %1053 = vmatmul.msk.f32.gmra.mxu0 %vm411_vm0, %v227_v36  ;;  %1094 = vmatmul.msk.f32.gmra.mxu2 %vm411_vm0, %v244_v38 }
  0x35   : > { %1077 = vmatmul.msk.f32.gmra.mxu1 %vm411_vm0, %v227_v36  ;;  %313 = vperm.xlu0 %1142, %v271_v37  }
  0x36   : > { %388 = vperm.xlu1 %1143, %v286_v39  }
  0x37   : > { %308 = vperm.xlu2 %1144, %v270_v40  }
  0x39   : > { %1072 = vmatmul.msk.f32.gmra.mxu3 %vm411_vm0, %v246_v49 }
  0x3c   : > { %1054 = vmatmul.msk.f32.gmra.mxu0 %vm411_vm0, %v228_v42  ;;  %1095 = vmatmul.msk.f32.gmra.mxu2 %vm411_vm0, %v245_v44 }
  0x3d   : > { %1078 = vmatmul.msk.f32.gmra.mxu1 %vm411_vm0, %v228_v42  ;;  %383 = vperm.xlu0 %1142, %v285_v43  }
  0x3e   : > { %303 = vperm.xlu1 %1143, %v269_v45  }
  0x3f   : > { %378 = vperm.xlu2 %1144, %v284_v46  }
  0x41   : > { %1073 = vmatmul.msk.f32.gmra.mxu3 %vm411_vm0, %v247_v52 }
  0x44   : > { %1055 = vmatmul.msk.f32.gmra.mxu0 %vm411_vm0, %v229_v47  ;;  %1096 = vmatmul.msk.f32.gmra.mxu2 %vm411_vm0, %v246_v49 }
  0x45   : > { %1079 = vmatmul.msk.f32.gmra.mxu1 %vm411_vm0, %v229_v47  ;;  %298 = vperm.xlu0 %1142, %v268_v48  }
  0x46   : > { %373 = vperm.xlu1 %1143, %v283_v56  }
  0x47   : > { %293 = vperm.xlu2 %1144, %v267_v50  }
  0x49   : > { %1074 = vmatmul.msk.f32.gmra.mxu3 %vm411_vm0, %v248_v54 }
  0x4c   : > { %1056 = vmatmul.msk.f32.gmra.mxu0 %vm411_vm0, %v230_v51  ;;  %1097 = vmatmul.msk.f32.gmra.mxu2 %vm411_vm0, %v247_v52 }
  0x4d   : > { %1080 = vmatmul.msk.f32.gmra.mxu1 %vm411_vm0, %v230_v51  ;;  %778 = vperm.xlu0 %1142, %v770_v58  }
  0x4e   : > { %783 = vperm.xlu1 %1143, %v771_v59  }
  0x4f   : > { %788 = vperm.xlu2 %1144, %v772_v1  }
  0x54   : > { %1057 = vmatmul.msk.f32.gmra.mxu0 %vm411_vm0, %v231_v53  ;;  %1098 = vmatmul.msk.f32.gmra.mxu2 %vm411_vm0, %v248_v54 }
  0x55   : > { %1081 = vmatmul.msk.f32.gmra.mxu1 %vm411_vm0, %v231_v53  ;;  %793 = vperm.xlu0 %1142, %v773_v61  }
  0x56   : > { %798 = vperm.xlu1 %1143, %v774_v62  }
  0x57   : > { %803 = vperm.xlu2 %1144, %v775_v3  }
  0x5c   : > { %1058 = vmatmul.msk.f32.gmra.mxu0 %vm411_vm0, %v232_v55 }
  0x5d   : > { %1082 = vmatmul.msk.f32.gmra.mxu1 %vm411_vm0, %v232_v55 }
  0x64   : > { %1059 = vmatmul.msk.f32.gmra.mxu0 %vm411_vm0, %v233_v57 }
  0x65   : > { %1083 = vmatmul.msk.f32.gmra.mxu1 %vm411_vm0, %v233_v57 }
  0x68   : > { %v1444_v16 = vpop.permute.xlu2 %348 }
  0x6c   : > { %1060 = vmatmul.msk.f32.gmra.mxu0 %vm411_vm0, %v234_v60 }
  0x6d   : > { %1084 = vmatmul.msk.f32.gmra.mxu1 %vm411_vm0, %v234_v60 }
  0x70   : > { %v1458_v23 = vpop.permute.xlu2 %343 }
  0x74   : > { %1061 = vmatmul.msk.f32.gmra.mxu0 %vm411_vm0, %v235_v63 }
  0x75   : > { %1085 = vmatmul.msk.f32.gmra.mxu1 %vm411_vm0, %v235_v63 }
  0x79   : > { %v1470_v30 = vpop.permute.xlu2 %408 }
  0x7c   : > { %1062 = vmatmul.msk.f32.gmra.mxu0 %vm411_vm0, %v236_v0 }
  0x7d   : > { %1086 = vmatmul.msk.f32.gmra.mxu1 %vm411_vm0, %v236_v0 }
  0x7f   : > { %v1442_v15 = vpop.permute.xlu0 %368 }
  0x80   : > { %v1420_v7 = vpop.permute.xlu1 %358 }
  0x81   : > { %v1476_v38 = vpop.permute.xlu2 %323 }
  0x84   : > { %1063 = vmatmul.msk.f32.gmra.mxu0 %vm411_vm0, %v237_v2 }
  0x85   : > { %1087 = vmatmul.msk.f32.gmra.mxu1 %vm411_vm0, %v237_v2 }
  0x87   : > { %v1454_v21 = vpop.permute.xlu0 %363 }
  0x88   : > { %v1438_v14 = vpop.permute.xlu1 %353 }
  0x89   : > { %v1487_v47 = vpop.permute.xlu2 %393 }
  0x8c   : > { %1064 = vmatmul.msk.f32.gmra.mxu0 %vm411_vm0, %v238_v4 }
  0x8d   : > { %1088 = vmatmul.msk.f32.gmra.mxu1 %vm411_vm0, %v238_v4 }
  0x8f   : > { %v1466_v28 = vpop.permute.xlu0 %338 }
  0x90   : > { %v1452_v19 = vpop.permute.xlu1 %333 }
  0x94   : > { %1065 = vmatmul.msk.f32.gmra.mxu0 %vm411_vm0, %v239_v5 }
  0x95   : > { %1089 = vmatmul.msk.f32.gmra.mxu1 %vm411_vm0, %v239_v5 }
  0x97   : > { %v329_v37 = vpop.permute.xlu0 %328 }
  0x98   : > { %v1462_v26 = vpop.permute.xlu1 %403 }
  0x9c   : > { %1066 = vmatmul.msk.f32.gmra.mxu0 %vm411_vm0, %v240_v6 }
  0x9d   : > { %1090 = vmatmul.msk.f32.gmra.mxu1 %vm411_vm0, %v240_v6 }
  0x9f   : > { %v1483_v43 = vpop.permute.xlu0 %398 }
  0xa0   : > { %v319_v32 = vpop.permute.xlu1 %318 }
  0xa1   : > { %v1422_v8 = vpop.f32.mrf.mxu0 }
  0xa2   : > { %v1427_v10 = vpop.f32.mrf.mxu1 }
  0xa3   : > { %1693 = vst [vmem:[#allocation2_spill] sm:$0xff] %v1427_v10 }
  0xa4   : > { %1067 = vmatmul.msk.f32.gmra.mxu0 %vm411_vm0, %v241_v9 }
  0xa5   : > { %1091 = vmatmul.msk.f32.gmra.mxu1 %vm411_vm0, %v241_v9 }
  0xa8   : > { %v1490_v52 = vpop.permute.xlu1 %388 }
  0xa9   : > { %v1431_v11 = vpop.f32.mrf.mxu0 }
  0xaa   : > { %v1436_v13 = vpop.f32.mrf.mxu1 }
  0xab   : > { %1694 = vst [vmem:[#allocation3_spill] sm:$0xff] %v1436_v13 }
  0xac   : > { %1068 = vmatmul.msk.f32.gmra.mxu0 %vm411_vm0, %v242_v12  ;;  %v558_v20 = vpop.f32.mrf.mxu3 }
  0xad   : > { %1092 = vmatmul.msk.f32.gmra.mxu1 %vm411_vm0, %v242_v12  ;;  %v559_v55 = vadd.f32 %v558_v20, %v1490_v52 }
  0xaf   : > { %v700_v61 = vmax.f32 %v559_v55, 0.0  ;;  %v1503_v12 = vpop.f32.mrf.mxu2 }
  0xb1   : > { %v1446_v17 = vpop.f32.mrf.mxu0  ;;  %v748_v1 = vmin.f32 %v700_v61, 6.0 }
  0xb2   : > { %v1448_v18 = vpop.f32.mrf.mxu1 }
  0xb4   : > { %1069 = vmatmul.msk.f32.gmra.mxu0 %vm411_vm0, %v1293_v41  ;;  %v561_v25 = vpop.f32.mrf.mxu3 }
  0xb5   : > { %v562_v49 = vadd.f32 %v561_v25, %v1487_v47 }
  0xb7   : > { %v702_v59 = vmax.f32 %v562_v49, 0.0  ;;  %v1520_v49 = vpop.permute.xlu2 %308 }
  0xb9   : > { %v1456_v22 = vpop.f32.mrf.mxu0  ;;  %v750_v0 = vmin.f32 %v702_v59, 6.0 }
  0xba   : > { %v1460_v24 = vpop.f32.mrf.mxu1 }
  0xbc   : > { %v564_v31 = vpop.f32.mrf.mxu3 }
  0xbd   : > { %v565_v45 = vadd.f32 %v564_v31, %v1483_v43 }
  0xbf   : > { %v704_v57 = vmax.f32 %v565_v45, 0.0  ;;  %v1516_v45 = vpop.permute.xlu0 %313 }
  0xc1   : > { %v1464_v27 = vpop.f32.mrf.mxu0  ;;  %v752_v62 = vmin.f32 %v704_v57, 6.0 }
  0xc2   : > { %v1468_v29 = vpop.f32.mrf.mxu1 }
  0xc4   : > { %v567_v39 = vpop.f32.mrf.mxu3 }
  0xc5   : > { %v568_v42 = vadd.f32 %v567_v39, %v1462_v26 }
  0xc7   : > { %v706_v50 = vmax.f32 %v568_v42, 0.0 }
  0xc9   : > { %v516_v33 = vpop.f32.mrf.mxu0  ;;  %v754_v60 = vmin.f32 %v706_v50, 6.0 }
  0xca   : > { %v1472_v34 = vadd.f32 %v516_v33, %v319_v32  ;;  %v605_v35 = vpop.f32.mrf.mxu1 }
  0xcb   : > { %v1474_v36 = vadd.f32 %v605_v35, %v319_v32  ;;  %v1507_v32 = vpop.f32.mrf.mxu2 }
  0xcc   : > { %v570_v44 = vpop.f32.mrf.mxu3 }
  0xcd   : > { %v571_v46 = vadd.f32 %v570_v44, %v1470_v30 }
  0xcf   : > { %v708_v51 = vmax.f32 %v571_v46, 0.0 }
  0xd1   : > { %v1478_v40 = vpop.f32.mrf.mxu0  ;;  %v756_v58 = vmin.f32 %v708_v51, 6.0 }
  0xd2   : > { %v1480_v41 = vpop.f32.mrf.mxu1 }
  0xd3   : > { %868 = vmatpush.msrb.mxu3 %v756_v58 }
  0xd5   : > { %869 = vmatpush.msrb.mxu3 %v754_v60 }
  0xd7   : > { %870 = vmatpush.msrb.mxu3 %v752_v62 }
  0xd9   : > { %v522_v48 = vpop.f32.mrf.mxu0  ;;  %871 = vmatpush.msrb.mxu3 %v750_v0 }
  0xda   : > { %v1492_v53 = vadd.f32 %v522_v48, %v329_v37  ;;  %v611_v54 = vpop.f32.mrf.mxu1 }
  0xdb   : > { %v1495_v56 = vadd.f32 %v611_v54, %v329_v37  ;;  %872 = vmatpush.msrb.mxu3 %v748_v1  ;;  %v1511_v37 = vpop.f32.mrf.mxu2 }
  0xe1   : > { %v525_v63 = vpop.f32.mrf.mxu0 }
  0xe2   : > { %v1497_v2 = vpop.f32.mrf.mxu1 }
  0xe3   : > { %v1524_v57 = vpop.f32.mrf.mxu2 }
  0xe9   : > { %v528_v3 = vpop.f32.mrf.mxu0 }
  0xea   : > { %v1499_v4 = vpop.f32.mrf.mxu1 }
  0xf1   : > { %v531_v5 = vpop.f32.mrf.mxu0 }
  0xf2   : > { %v1501_v6 = vpop.f32.mrf.mxu1  ;;  %v532_v60 = vadd.f32 %v531_v5, %v1458_v23 }
  0xf9   : > { %v534_v9 = vpop.f32.mrf.mxu0 }
  0xfa   : > { %v1505_v25 = vpop.f32.mrf.mxu1  ;;  %v535_v55 = vadd.f32 %v534_v9, %v1444_v16  ;;  %v526_v9 = vadd.f32 %v525_v63, %v1452_v19  ;;  %v676_v63 = vmax.f32 %v1492_v53, 0.0 }
 0x101   : > { %v537_v20 = vpop.f32.mrf.mxu0 }
 0x102   : > { %v1509_v33 = vpop.f32.mrf.mxu1  ;;  %v538_v50 = vadd.f32 %v537_v20, %v1438_v14 }
 0x104   : > { %v686_v61 = vmax.f32 %v538_v50, 0.0 }
 0x109   : > { %v540_v31 = vpop.f32.mrf.mxu0 }
 0x10a   : > { %v1513_v39 = vpop.f32.mrf.mxu1  ;;  %v541_v46 = vadd.f32 %v540_v31, %v1420_v7  ;;  %v529_v31 = vadd.f32 %v528_v3, %v1466_v28  ;;  %v656_v3 = vpop.f32.mrf.mxu2 }
 0x10c   : > { %v688_v58 = vmax.f32 %v541_v46, 0.0  ;;  %v734_v46 = vmin.f32 %v686_v61, 6.0  ;;  %v680_v5 = vmax.f32 %v529_v31, 0.0 }
 0x10e   : > { %v736_v20 = vmin.f32 %v688_v58, 6.0  ;;  %v1535_v58 = vpop.permute.xlu1 %303 }
 0x10f   : > { %v508_v53 = vadd.f32 %v1446_v17, %v1535_v58 }
 0x111   : > { %v543_v35 = vpop.f32.mrf.mxu0 }
 0x112   : > { %v544_v42 = vadd.f32 %v543_v35, %v1454_v21  ;;  %v632_v0 = vpop.f32.mrf.mxu1  ;;  %v684_v35 = vmax.f32 %v535_v55, 0.0 }
 0x114   : > { %v690_v51 = vmax.f32 %v544_v42, 0.0  ;;  %v1528_v42 = vpop.permute.xlu0 %383  ;;  %v732_v50 = vmin.f32 %v684_v35, 6.0 }
 0x116   : > { %v738_v62 = vmin.f32 %v690_v51, 6.0  ;;  %v520_v51 = vadd.f32 %v1478_v40, %v1476_v38  ;;  %v511_v40 = vadd.f32 %v1456_v22, %v1520_v49 }
 0x118   : > { %v674_v31 = vmax.f32 %v520_v51, 0.0 }
 0x119   : > { %v546_v44 = vpop.f32.mrf.mxu0 }
 0x11a   : > { %v547_v48 = vadd.f32 %v546_v44, %v1442_v15  ;;  %v682_v44 = vmax.f32 %v532_v60, 0.0  ;;  %v728_v60 = vmin.f32 %v680_v5, 6.0  ;;  %v635_v61 = vpop.f32.mrf.mxu1 }
 0x11c   : > { %v692_v54 = vmax.f32 %v547_v48, 0.0  ;;  %v1531_v48 = vpop.permute.xlu2 %378  ;;  %v730_v55 = vmin.f32 %v682_v44, 6.0  ;;  %v724_v44 = vmin.f32 %v676_v63, 6.0 }
 0x11e   : > { %v740_v59 = vmin.f32 %v692_v54, 6.0  ;;  %v678_v54 = vmax.f32 %v526_v9, 0.0  ;;  %v672_v9 = vmax.f32 %v1472_v34, 0.0  ;;  %v659_v34 = vpop.f32.mrf.mxu2 }
 0x11f   : > { %v660_v10 = vadd.f32 %v659_v34, %v1470_v30 }
 0x120   : > { %825 = vmatpush.msrb.mxu2 %v740_v59  ;;  %v726_v35 = vmin.f32 %v678_v54, 6.0  ;;  %v1552_v54 = vpop.permute.xlu1 %373  ;;  %v720_v17 = vmin.f32 %v672_v9, 6.0 }
 0x121   : > { %v549_v1 = vpop.f32.mrf.mxu0 }
 0x122   : > { %826 = vmatpush.msrb.mxu2 %v738_v62  ;;  %v514_v62 = vadd.f32 %v1464_v27, %v1516_v45  ;;  %v550_v63 = vadd.f32 %v549_v1, %v1552_v54  ;;  %v633_v1 = vadd.f32 %v632_v0, %v1454_v21  ;;  %v627_v0 = vadd.f32 %v1509_v33, %v1438_v14  ;;  %v1582_v33 = vld [vmem:[%s1689_s3] sm:$0xff] }
 0x124   : > { %827 = vmatpush.msrb.mxu2 %v736_v20  ;;  %v1540_v20 = vpop.permute.xlu0 %298  ;;  %v670_v5 = vmax.f32 %v514_v62, 0.0 }
 0x125   : > { %1695 = vst [vmem:[#allocation4_spill] sm:$0xff] %v1540_v20  ;;  %v505_v51 = vadd.f32 %v1431_v11, %v1540_v20 }
 0x126   : > { %828 = vmatpush.msrb.mxu2 %v734_v46  ;;  %v1547_v46 = vpop.permute.xlu2 %293  ;;  %v718_v11 = vmin.f32 %v670_v5, 6.0  ;;  %v654_v5 = vadd.f32 %v1524_v57, %v1483_v43  ;;  %v648_v57 = vadd.f32 %v1507_v32, %v1490_v52  ;;  %v618_v52 = vadd.f32 %v1499_v4, %v1466_v28  ;;  %v1601_v28 = vld [vmem:[%s1689_s3 + $0x18] sm:$0xff] }
 0x127   : > { %v502_v62 = vadd.f32 %v1422_v8, %v1547_v46  ;;  %v664_v13 = vmax.f32 %v505_v51, 0.0  ;;  %v691_v51 = vmax.f32 %v633_v1, 0.0 }
 0x128   : > { %829 = vmatpush.msrb.mxu2 %v732_v50  ;;  %v722_v50 = vmin.f32 %v674_v31, 6.0  ;;  %v636_v31 = vadd.f32 %v635_v61, %v1442_v15  ;;  %v630_v15 = vadd.f32 %v1513_v39, %v1420_v7  ;;  %v1573_v7 = vld [vmem:[%s1689_s3 + $0x8] sm:$0xff] }
 0x129   : > { %v552_v59 = vpop.f32.mrf.mxu0  ;;  %v662_v20 = vmax.f32 %v502_v62, 0.0  ;;  %v712_v21 = vmin.f32 %v664_v13, 6.0 }
 0x12a   : > { %830 = vmatpush.msrb.mxu2 %v730_v55  ;;  %v553_v27 = vadd.f32 %v552_v59, %v1531_v48  ;;  %v668_v55 = vmax.f32 %v511_v40, 0.0  ;;  %v666_v59 = vmax.f32 %v508_v53, 0.0  ;;  %v1560_v40 = vpop.f32.mrf.mxu1  ;;  %v657_v53 = vadd.f32 %v656_v3, %v1462_v26 }
 0x12b   : > { %v693_v61 = vmax.f32 %v636_v31, 0.0  ;;  %v651_v26 = vadd.f32 %v1511_v37, %v1487_v47  ;;  %v710_v39 = vmin.f32 %v662_v20, 6.0  ;;  %v689_v43 = vmax.f32 %v630_v15, 0.0 }
 0x12c   : > { %831 = vmatpush.msrb.mxu2 %v728_v60  ;;  %v716_v9 = vmin.f32 %v668_v55, 6.0  ;;  %v714_v8 = vmin.f32 %v666_v59, 6.0  ;;  %v707_v13 = vmax.f32 %v657_v53, 0.0  ;;  %v705_v3 = vmax.f32 %v654_v5, 0.0 }
 0x12d   : > { %v741_v14 = vmin.f32 %v693_v61, 6.0  ;;  %v687_v47 = vmax.f32 %v627_v0, 0.0  ;;  %v739_v37 = vmin.f32 %v691_v51, 6.0  ;;  %v645_v20 = vadd.f32 %v1503_v12, %v1528_v42  ;;  %v763_v61 = vld [vmem:[%s1689_s3 + $0x28] sm:$0xff] }
 0x12e   : > { %832 = vmatpush.msrb.mxu2 %v726_v35  ;;  %v696_v35 = vmax.f32 %v553_v27, 0.0  ;;  %v709_v27 = vmax.f32 %v660_v10, 0.0  ;;  %v624_v10 = vadd.f32 %v1505_v25, %v1444_v16  ;;  %v621_v16 = vadd.f32 %v1501_v6, %v1458_v23 }
 0x12f   : > { %v703_v34 = vmax.f32 %v651_v26, 0.0  ;;  %v615_v23 = vadd.f32 %v1497_v2, %v1452_v19  ;;  %v701_v6 = vmax.f32 %v648_v57, 0.0  ;;  %v753_v59 = vmin.f32 %v705_v3, 6.0  ;;  %v1608_v2 = vld [vmem:[%s1689_s3 + $0x10] sm:$0xff]  ;;  %v1698_v26 = vld [vmem:[#allocation2_spill] sm:$0xff] }
 0x130   : > { %833 = vmatpush.msrb.mxu2 %v724_v44  ;;  %v744_v30 = vmin.f32 %v696_v35, 6.0  ;;  %v757_v25 = vmin.f32 %v709_v27, 6.0  ;;  %v685_v32 = vmax.f32 %v624_v10, 0.0  ;;  %v683_v62 = vmax.f32 %v621_v16, 0.0 }
 0x131   : > { %v555_v22 = vpop.f32.mrf.mxu0  ;;  %v735_v31 = vmin.f32 %v687_v47, 6.0  ;;  %v699_v4 = vmax.f32 %v645_v20, 0.0  ;;  %v751_v35 = vmin.f32 %v703_v34, 6.0  ;;  %v639_v19 = vadd.f32 %v1560_v40, %v1552_v54  ;;  %v767_v47 = vld [vmem:[%s1689_s3 + $0x48] sm:$0xff]  ;;  %v768_v20 = vld [vmem:[%s1689_s3 + $0x50] sm:$0xff]  ;;  %v779_v34 = vpop.permute.xlu0 %778 }
 0x132   : > { %v556_v60 = vadd.f32 %v555_v22, %v1528_v42  ;;  %834 = vmatpush.msrb.mxu2 %v722_v50  ;;  %v694_v22 = vmax.f32 %v550_v63, 0.0  ;;  %v641_v63 = vpop.f32.mrf.mxu1  ;;  %v681_v42 = vmax.f32 %v618_v52, 0.0  ;;  %v749_v1 = vmin.f32 %v701_v6, 6.0 }
 0x133   : > { %v642_v12 = vadd.f32 %v641_v63, %v1531_v48  ;;  %v609_v48 = vadd.f32 %v1480_v41, %v1476_v38  ;;  %v677_v54 = vmax.f32 %v1495_v56, 0.0  ;;  %v747_v40 = vmin.f32 %v699_v4, 6.0 }
 0x134   : > { %v698_v44 = vmax.f32 %v556_v60, 0.0  ;;  %835 = vmatpush.msrb.mxu2 %v720_v17  ;;  %v742_v55 = vmin.f32 %v694_v22, 6.0  ;;  %v755_v60 = vmin.f32 %v707_v13, 6.0  ;;  %v737_v17 = vmin.f32 %v689_v43, 6.0 }
 0x135   : > { %v731_v22 = vmin.f32 %v683_v62, 6.0  ;;  %v603_v38 = vadd.f32 %v1468_v29, %v1516_v45  ;;  %v675_v41 = vmax.f32 %v609_v48, 0.0  ;;  %v600_v56 = vadd.f32 %v1460_v24, %v1520_v49  ;;  %v762_v29 = vld [vmem:[%s1689_s3 + $0x20] sm:$0xff]  ;;  %v1696_v24 = vld [vmem:[#allocation4_spill] sm:$0xff] }
 0x136   : > { %836 = vmatpush.msrb.mxu2 %v718_v11  ;;  %v746_v50 = vmin.f32 %v698_v44, 6.0  ;;  %v733_v44 = vmin.f32 %v685_v32, 6.0  ;;  %v679_v11 = vmax.f32 %v615_v23, 0.0  ;;  %v725_v5 = vmin.f32 %v677_v54, 6.0 }
 0x137   : > { %v597_v45 = vadd.f32 %v1448_v18, %v1535_v58  ;;  %v723_v0 = vmin.f32 %v675_v41, 6.0  ;;  %v669_v51 = vmax.f32 %v600_v56, 0.0  ;;  %v765_v18 = vld [vmem:[%s1689_s3 + $0x38] sm:$0xff] }
 0x138   : > { %837 = vmatpush.msrb.mxu2 %v716_v9  ;;  %873 = vmatpush.msrb.mxu3 %v746_v50  ;;  %v697_v9 = vmax.f32 %v642_v12, 0.0  ;;  %v729_v50 = vmin.f32 %v681_v42, 6.0  ;;  %v727_v53 = vmin.f32 %v679_v11, 6.0  ;;  %v789_v12 = vpop.permute.xlu2 %788 }
 0x139   : > { %v667_v10 = vmax.f32 %v597_v45, 0.0  ;;  %v717_v43 = vmin.f32 %v669_v51, 6.0 }
 0x13a   : > { %838 = vmatpush.msrb.mxu2 %v714_v8  ;;  %874 = vmatpush.msrb.mxu3 %v744_v30  ;;  %v695_v8 = vmax.f32 %v639_v19, 0.0  ;;  %v745_v15 = vmin.f32 %v697_v9, 6.0  ;;  %v673_v30 = vmax.f32 %v1474_v36, 0.0  ;;  %v1697_v36 = vld [vmem:[#allocation3_spill] sm:$0xff]  ;;  %v794_v19 = vpop.permute.xlu0 %793 }
 0x13b   : > { %v594_v49 = vadd.f32 %v1697_v36, %v1696_v24  ;;  %v715_v3 = vmin.f32 %v667_v10, 6.0 }
 0x13c   : > { %839 = vmatpush.msrb.mxu2 %v712_v21  ;;  %875 = vmatpush.msrb.mxu3 %v742_v55  ;;  %v743_v27 = vmin.f32 %v695_v8, 6.0  ;;  %v671_v21 = vmax.f32 %v603_v38, 0.0  ;;  %v721_v55 = vmin.f32 %v673_v30, 6.0 }
 0x13d   : > { %1099 = vmatmul.msk.f32.vlgmr.msrb.gmra.mxu3 %vm806_vm1, %v1573_v7  ;;  %v665_v58 = vmax.f32 %v594_v49, 0.0 }
 0x13e   : > { %895 = vmatpush.msra.mxu3 %v741_v14  ;;  %840 = vmatpush.msrb.mxu2 %v710_v39  ;;  %v591_v39 = vadd.f32 %v1698_v26, %v1547_v46  ;;  %v719_v13 = vmin.f32 %v671_v21, 6.0  ;;  %v764_v14 = vld [vmem:[%s1689_s3 + $0x30] sm:$0xff] }
 0x13f   : > { %841 = vmatmul.f32.vlgmr.msrb.gmra.mxu2 %v1582_v33  ;;  %v713_v46 = vmin.f32 %v665_v58, 6.0 }
 0x140   : > { %896 = vmatpush.msra.mxu3 %v739_v37  ;;  %938 = vmatpush.msra.mxu2 %v757_v25  ;;  %v663_v57 = vmax.f32 %v591_v39, 0.0  ;;  %v766_v25 = vld [vmem:[%s1689_s3 + $0x40] sm:$0xff]  ;;  %v769_v37 = vld [vmem:[%s1689_s3 + $0x58] sm:$0xff]  ;;  %v804_v41 = vpop.permute.xlu2 %803 }
 0x142   : > { %897 = vmatpush.msra.mxu3 %v737_v17  ;;  %939 = vmatpush.msra.mxu2 %v755_v60  ;;  %v711_v16 = vmin.f32 %v663_v57, 6.0  ;;  %v784_v17 = vpop.permute.xlu1 %783 }
 0x144   : > { %898 = vmatpush.msra.mxu3 %v735_v31  ;;  %940 = vmatpush.msra.mxu2 %v753_v59 }
 0x145   : > { %1100 = vmatmul.msk.f32.gmra.mxu3 %vm806_vm1, %v1601_v28 }
 0x146   : > { %899 = vmatpush.msra.mxu3 %v733_v44  ;;  %941 = vmatpush.msra.mxu2 %v751_v35 }
 0x147   : > { %844 = vmatmul.f32.gmra.mxu2 %v1608_v2 }
 0x148   : > { %900 = vmatpush.msra.mxu3 %v731_v22  ;;  %942 = vmatpush.msra.mxu2 %v749_v1 }
 0x14a   : > { %901 = vmatpush.msra.mxu3 %v729_v50  ;;  %943 = vmatpush.msra.mxu2 %v747_v40  ;;  %v799_v9 = vpop.permute.xlu1 %798 }
 0x14c   : > { %902 = vmatpush.msra.mxu3 %v727_v53  ;;  %944 = vmatpush.msra.mxu2 %v745_v15 }
 0x14d   : > { %1101 = vmatmul.msk.f32.gmra.mxu3 %vm806_vm1, %v763_v61 }
 0x14e   : > { %903 = vmatpush.msra.mxu3 %v725_v5  ;;  %945 = vmatpush.msra.mxu2 %v743_v27 }
 0x14f   : > { %847 = vmatmul.f32.gmra.mxu2 %v762_v29 }
 0x150   : > { %904 = vmatpush.msra.mxu3 %v723_v0 }
 0x152   : > { %905 = vmatpush.msra.mxu3 %v721_v55 }
 0x154   : > { %906 = vmatpush.msra.mxu3 %v719_v13 }
 0x155   : > { %1102 = vmatmul.msk.f32.gmra.mxu3 %vm806_vm1, %v765_v18 }
 0x156   : > { %907 = vmatpush.msra.mxu3 %v717_v43 }
 0x157   : > { %850 = vmatmul.f32.gmra.mxu2 %v764_v14 }
 0x158   : > { %908 = vmatpush.msra.mxu3 %v715_v3 }
 0x15a   : > { %909 = vmatpush.msra.mxu3 %v713_v46 }
 0x15c   : > { %910 = vmatpush.msra.mxu3 %v711_v16 }
 0x15d   : > { %1103 = vmatmul.msk.f32.gmra.mxu3 %vm806_vm1, %v767_v47 }
 0x15f   : > { %853 = vmatmul.f32.gmra.mxu2 %v766_v25 }
 0x165   : > { %1104 = vmatmul.msk.f32.gmra.mxu3 %vm806_vm1, %v769_v37 }
 0x167   : > { %856 = vmatmul.f32.gmra.mxu2 %v768_v20 }
 0x16d   : > { %911 = vmatmul.f32.vlgmr.msra.gmra.mxu3 %v1582_v33 }
 0x16f   : > { %1105 = vmatmul.msk.f32.vlgmr.msra.gmra.mxu2 %vm806_vm1, %v1573_v7 }
 0x175   : > { %914 = vmatmul.f32.gmra.mxu3 %v1608_v2 }
 0x177   : > { %1106 = vmatmul.msk.f32.gmra.mxu2 %vm806_vm1, %v1601_v28 }
 0x17d   : > { %917 = vmatmul.f32.gmra.mxu3 %v762_v29 }
 0x17f   : > { %1107 = vmatmul.msk.f32.gmra.mxu2 %vm806_vm1, %v763_v61 }
 0x185   : > { %920 = vmatmul.f32.gmra.mxu3 %v764_v14 }
 0x187   : > { %1108 = vmatmul.msk.f32.gmra.mxu2 %vm806_vm1, %v765_v18 }
 0x18d   : > { %923 = vmatmul.f32.gmra.mxu3 %v766_v25 }
 0x18f   : > { %1109 = vmatmul.msk.f32.gmra.mxu2 %vm806_vm1, %v767_v47 }
 0x195   : > { %926 = vmatmul.f32.gmra.mxu3 %v768_v20 }
 0x197   : > { %1110 = vmatmul.msk.f32.gmra.mxu2 %vm806_vm1, %v769_v37 }
 0x1c0   : > { %v877_v33 = vpop.f32.mrf.mxu3 }
 0x1c2   : > { %v842_v7 = vpop.f32.mrf.mxu2 }
 0x1c3   : > { %v843_v63 = vadd.f32 %v842_v7, %v779_v34 }
 0x1c5   : > { %v878_v52 = vadd.f32 %v877_v33, %v843_v63 }
 0x1c7   : > { %v965_v32 = vmin.f32 %v878_v52, 0.16666667 }
 0x1c8   : > { %v880_v60 = vpop.f32.mrf.mxu3 }
 0x1c9   : > { %977 = vst [vmem:[%s1669_s21] sm:$0xff] %v965_v32 }
 0x1ca   : > { %v845_v23 = vpop.f32.mrf.mxu2 }
 0x1cb   : > { %v846_v6 = vadd.f32 %v845_v23, %v784_v17 }
 0x1cd   : > { %v881_v62 = vadd.f32 %v880_v60, %v846_v6 }
 0x1cf   : > { %v967_v59 = vmin.f32 %v881_v62, 0.16666667 }
 0x1d0   : > { %v883_v31 = vpop.f32.mrf.mxu3 }
 0x1d1   : > { %979 = vst [vmem:[%s1669_s21 + $0x10] sm:$0xff] %v967_v59 }
 0x1d2   : > { %v848_v28 = vpop.f32.mrf.mxu2 }
 0x1d3   : > { %v849_v4 = vadd.f32 %v848_v28, %v789_v12 }
 0x1d5   : > { %v884_v42 = vadd.f32 %v883_v31, %v849_v4 }
 0x1d7   : > { %v969_v35 = vmin.f32 %v884_v42, 0.16666667 }
 0x1d8   : > { %v886_v44 = vpop.f32.mrf.mxu3 }
 0x1d9   : > { %981 = vst [vmem:[%s1669_s21 + $0x20] sm:$0xff] %v969_v35 }
 0x1da   : > { %v851_v2 = vpop.f32.mrf.mxu2 }
 0x1db   : > { %v852_v48 = vadd.f32 %v851_v2, %v794_v19 }
 0x1dd   : > { %v887_v11 = vadd.f32 %v886_v44, %v852_v48 }
 0x1df   : > { %v971_v1 = vmin.f32 %v887_v11, 0.16666667 }
 0x1e0   : > { %v889_v22 = vpop.f32.mrf.mxu3 }
 0x1e1   : > { %983 = vst [vmem:[%s1669_s21 + $0x30] sm:$0xff] %v971_v1 }
 0x1e2   : > { %v854_v54 = vpop.f32.mrf.mxu2 }
 0x1e3   : > { %v855_v40 = vadd.f32 %v854_v54, %v799_v9 }
 0x1e5   : > { %v890_v50 = vadd.f32 %v889_v22, %v855_v40 }
 0x1e7   : > { %v973_v8 = vmin.f32 %v890_v50, 0.16666667 }
 0x1e8   : > { %v892_v38 = vpop.f32.mrf.mxu3 }
 0x1e9   : > { %985 = vst [vmem:[%s1669_s21 + $0x40] sm:$0xff] %v973_v8 }
 0x1ea   : > { %v857_v53 = vpop.f32.mrf.mxu2 }
 0x1eb   : > { %v858_v15 = vadd.f32 %v857_v53, %v804_v41 }
 0x1ed   : > { %v893_v61 = vadd.f32 %v892_v38, %v858_v15 }
 0x1ef   : > { %v975_v56 = vmin.f32 %v893_v61, 0.16666667 }
 0x1f0   : > { %v912_v30 = vpop.f32.mrf.mxu3 }
 0x1f1   : > { %987 = vst [vmem:[%s1669_s21 + $0x50] sm:$0xff] %v975_v56  ;;  %v913_v5 = vadd.f32 %v912_v30, %v779_v34 }
 0x1f2   : > { %v947_v27 = vpop.f32.mrf.mxu2 }
 0x1f3   : > { %v948_v29 = vadd.f32 %v947_v27, %v913_v5 }
 0x1f5   : > { %v966_v45 = vmin.f32 %v948_v29, 0.16666667 }
 0x1f7   : > { %978 = vst [vmem:[%s1669_s21 + $0x8] sm:$0xff] %v966_v45 }
 0x1f8   : > { %v915_v21 = vpop.f32.mrf.mxu3 }
 0x1f9   : > { %v916_v0 = vadd.f32 %v915_v21, %v784_v17 }
 0x1fa   : > { %v950_v24 = vpop.f32.mrf.mxu2 }
 0x1fb   : > { %v951_v36 = vadd.f32 %v950_v24, %v916_v0 }
 0x1fd   : > { %v968_v49 = vmin.f32 %v951_v36, 0.16666667 }
 0x1ff   : > { %980 = vst [vmem:[%s1669_s21 + $0x18] sm:$0xff] %v968_v49 }
 0x200   : > { %v918_v51 = vpop.f32.mrf.mxu3 }
 0x201   : > { %v919_v55 = vadd.f32 %v918_v51, %v789_v12 }
 0x202   : > { %v953_v26 = vpop.f32.mrf.mxu2 }
 0x203   : > { %v954_v39 = vadd.f32 %v953_v26, %v919_v55 }
 0x205   : > { %v970_v10 = vmin.f32 %v954_v39, 0.16666667 }
 0x207   : > { %982 = vst [vmem:[%s1669_s21 + $0x28] sm:$0xff] %v970_v10 }
 0x208   : > { %v921_v13 = vpop.f32.mrf.mxu3 }
 0x209   : > { %v922_v18 = vadd.f32 %v921_v13, %v794_v19 }
 0x20a   : > { %v956_v58 = vpop.f32.mrf.mxu2 }
 0x20b   : > { %v957_v43 = vadd.f32 %v956_v58, %v922_v18 }
 0x20d   : > { %v972_v14 = vmin.f32 %v957_v43, 0.16666667 }
 0x20f   : > { %984 = vst [vmem:[%s1669_s21 + $0x38] sm:$0xff] %v972_v14 }
 0x210   : > { %v924_v57 = vpop.f32.mrf.mxu3 }
 0x211   : > { %v925_v3 = vadd.f32 %v924_v57, %v799_v9 }
 0x212   : > { %v959_v46 = vpop.f32.mrf.mxu2 }
 0x213   : > { %v960_v16 = vadd.f32 %v959_v46, %v925_v3 }
 0x215   : > { %v974_v47 = vmin.f32 %v960_v16, 0.16666667 }
 0x217   : > { %986 = vst [vmem:[%s1669_s21 + $0x48] sm:$0xff] %v974_v47 }
 0x218   : > { %v927_v25 = vpop.f32.mrf.mxu3 }
 0x219   : > { %v928_v37 = vadd.f32 %v927_v25, %v804_v41 }
 0x21a   : > { %v962_v20 = vpop.f32.mrf.mxu2 }
 0x21b   : > { %v963_v33 = vadd.f32 %v962_v20, %v928_v37 }
 0x21d   : > { %v976_v34 = vmin.f32 %v963_v33, 0.16666667 }
 0x21f   : > { %988 = vst [vmem:[%s1669_s21 + $0x58] sm:$0xff] %v976_v34 }
 0x220 PF: > { %s15_s18 = sadd.s32 1, %s1151_s18  }
 0x221   : > { %p12_p4 = scmp.ge.s32.totalorder %s15_s18, 4  }
 0x223   :  { %14 = sbr.rel (!%p12_p4) target bundleno = 1 (0x1), region = 70 }

</bundles_post_ra>
